<compile_context>
chip_gen: v7x
topology: tpu7x:2x2x1
jax: 0.10.0
libtpu: 0.0.40
codegen_flags: <defaults>
</compile_context>

<pallas_src>
import numpy as np
import jax
import jax.numpy as jnp
from jax.experimental import pallas as pl
from jax.experimental.pallas import tpu as pltpu


# --------------------------------------------------------------------------
# Pallas kernel: one batch element per grid step.
# --------------------------------------------------------------------------
def channel_attention_kernel(x_ref, w1_ref, w2_ref, o_ref):
    """
    x_ref : (1, C, HW)  activations, channels on sublanes, HW on lanes
    w1_ref: (Ch, C)     fc1 weight (PyTorch Conv2d (out,in,1,1) squeezed)
    w2_ref: (C, Ch)     fc2 weight
    o_ref : (1, C, 1)   sigmoid(fc2(relu(fc1(avg))) + fc2(relu(fc1(max))))
    """
    x = x_ref[0]                                         # (C, HW) f32
    inv_hw = 1.0 / x.shape[-1]

    # Global average / max pooling == lane-axis reductions (XLU), no matmuls.
    avg = jnp.sum(x, axis=-1, keepdims=True) * inv_hw    # (C, 1)
    mx = jnp.max(x, axis=-1, keepdims=True)              # (C, 1)

    w1 = w1_ref[...]                                     # (Ch, C)
    w2 = w2_ref[...]                                     # (C, Ch)

    def mlp(v):                                          # fc2(relu(fc1(v)))
        h = jnp.maximum(
            jnp.dot(w1, v, preferred_element_type=jnp.float32), 0.0)
        return jnp.dot(w2, h, preferred_element_type=jnp.float32)

    s = mlp(avg) + mlp(mx)                               # (C, 1)
    o_ref[0] = 1.0 / (1.0 + jnp.exp(-s))                 # sigmoid


# --------------------------------------------------------------------------
# Wrapper: NCHW in -> (N, C, 1, 1) out (PyTorch convention).
# --------------------------------------------------------------------------
def channel_attention_forward(x_nchw, fc1_w, fc2_w):
    N, C, H, W = x_nchw.shape
    HW = H * W
    Ch = fc1_w.shape[0]

    # NCHW is contiguous, so this reshape is layout-free: (N, C, HW),
    # HW lane-dense.
    x_flat = x_nchw.reshape(N, C, HW)

    out = pl.pallas_call(
        channel_attention_kernel,
        out_shape=jax.ShapeDtypeStruct((N, C, 1), jnp.float32),
        grid=(N,),
        in_specs=[
            pl.BlockSpec((1, C, HW), lambda n: (n, 0, 0)),
            pl.BlockSpec((Ch, C), lambda n: (0, 0)),
            pl.BlockSpec((C, Ch), lambda n: (0, 0)),
        ],
        out_specs=pl.BlockSpec((1, C, 1), lambda n: (n, 0, 0)),
        compiler_params=pltpu.CompilerParams(
            dimension_semantics=("parallel",)),   # batch elems independent
    )(x_flat, fc1_w, fc2_w)

    return out.reshape(N, C, 1, 1)


# --------------------------------------------------------------------------
# Deterministic parameter init (shapes match the PyTorch module, bias=False).
# fc1: Conv2d(C, C//16, 1)  -> weight (C//16, C)
# fc2: Conv2d(C//16, C, 1)  -> weight (C, C//16)
# --------------------------------------------------------------------------
def init_params(key, in_planes):
    hidden = in_planes // 16           # hard-coded //16 in the PyTorch module
    assert hidden >= 1, "ChannelAttention requires in_planes >= 16"
    k1, k2 = jax.random.split(key)
    fc1_w = jax.random.normal(k1, (hidden, in_planes), jnp.float32) / np.sqrt(
        in_planes)
    fc2_w = jax.random.normal(k2, (in_planes, hidden), jnp.float32) / np.sqrt(
        hidden)
    return fc1_w, fc2_w


# --------------------------------------------------------------------------
# Pure-JAX reference (independent formulation) for sanity checking.
# --------------------------------------------------------------------------
def channel_attention_reference(x_nchw, fc1_w, fc2_w):
    avg = jnp.mean(x_nchw, axis=(2, 3))              # (N, C)
    mx = jnp.max(x_nchw, axis=(2, 3))                # (N, C)

    def mlp(v):
        h = jnp.maximum(v @ fc1_w.T, 0.0)            # (N, Ch)
        return h @ fc2_w.T                           # (N, C)

    out = jax.nn.sigmoid(mlp(avg) + mlp(mx))
    return out.reshape(x_nchw.shape[0], x_nchw.shape[1], 1, 1)


if __name__ == "__main__":
    # in_planes must be >= 16 (fc1 uses in_planes // 16 output channels).
    N, C, H, W = 2, 32, 16, 16
    key = jax.random.PRNGKey(0)
    pkey, xkey = jax.random.split(key)

    fc1_w, fc2_w = init_params(pkey, C)
    x = jax.random.normal(xkey, (N, C, H, W), jnp.float32)

    out = channel_attention_forward(x, fc1_w, fc2_w)
    out = jax.block_until_ready(out)
    assert out.shape == (N, C, 1, 1)

    ref = jax.block_until_ready(channel_attention_reference(x, fc1_w, fc2_w))
    np.testing.assert_allclose(np.asarray(out), np.asarray(ref),
                               rtol=1e-5, atol=1e-6)

    print("KERNEL_OK")
</pallas_src>

<mosaic_0001>
module attributes {stable_mosaic.version = 11 : i64} {
  func.func @channel_attention_kernel(%arg0: i32, %arg1: memref<1x32x256xf32, #tpu.memory_space<vmem>>, %arg2: memref<2x32xf32, #tpu.memory_space<vmem>>, %arg3: memref<32x2xf32, #tpu.memory_space<vmem>>, %arg4: memref<1x32x1xf32, #tpu.memory_space<vmem>>) attributes {dimension_semantics = [#tpu.dimension_semantics<parallel>], iteration_bounds = array<i64: 2>, scalar_prefetch = 0 : i64, scratch_operands = 0 : i64, tpu.core_type = #tpu.core_type<tc>, window_params = [{transform_indices = @transform_0, window_bounds = array<i64: 1, 32, 256>}, {pipeline_mode = #tpu.pipeline_mode<synchronous>, transform_indices = @transform_1, window_bounds = array<i64: 2, 32>}, {pipeline_mode = #tpu.pipeline_mode<synchronous>, transform_indices = @transform_2, window_bounds = array<i64: 32, 2>}, {transform_indices = @transform_3, window_bounds = array<i64: 1, 32, 1>}]} {
    %c0 = arith.constant 0 : index
    %c0_0 = arith.constant 0 : index
    %c0_1 = arith.constant 0 : index
    %0 = vector.load %arg1[%c0, %c0_0, %c0_1] : memref<1x32x256xf32, #tpu.memory_space<vmem>>, vector<1x32x256xf32>
    %1 = vector.shape_cast %0 : vector<1x32x256xf32> to vector<32x256xf32>
    %cst = arith.constant dense<0.000000e+00> : vector<32xf32>
    %2 = vector.multi_reduction <add>, %1, %cst [1] : vector<32x256xf32> to vector<32xf32>
    %3 = vector.shape_cast %2 : vector<32xf32> to vector<32x1xf32>
    %cst_2 = arith.constant 3.906250e-03 : f32
    %4 = vector.broadcast %cst_2 : f32 to vector<32x1xf32>
    %5 = arith.mulf %3, %4 : vector<32x1xf32>
    %cst_3 = arith.constant dense<0xFF800000> : vector<32xf32>
    %6 = vector.multi_reduction <maximumf>, %1, %cst_3 [1] : vector<32x256xf32> to vector<32xf32>
    %7 = vector.shape_cast %6 : vector<32xf32> to vector<32x1xf32>
    %c0_4 = arith.constant 0 : index
    %c0_5 = arith.constant 0 : index
    %8 = vector.load %arg2[%c0_4, %c0_5] : memref<2x32xf32, #tpu.memory_space<vmem>>, vector<2x32xf32>
    %c0_6 = arith.constant 0 : index
    %c0_7 = arith.constant 0 : index
    %9 = vector.load %arg3[%c0_6, %c0_7] : memref<32x2xf32, #tpu.memory_space<vmem>>, vector<32x2xf32>
    %cst_8 = arith.constant dense<0.000000e+00> : vector<2x1xf32>
    %10 = tpu.matmul %8, %5, %cst_8 {dimension_numbers = #tpu.dot_dimension_numbers<[1], [0], [0], [1], [0, 0, 1, 1], [], []>} : vector<2x32xf32>, vector<32x1xf32>, vector<2x1xf32> -> vector<2x1xf32>
    %cst_9 = arith.constant 0.000000e+00 : f32
    %11 = vector.broadcast %cst_9 : f32 to vector<2x1xf32>
    %12 = arith.maximumf %10, %11 : vector<2x1xf32>
    %cst_10 = arith.constant dense<0.000000e+00> : vector<32x1xf32>
    %13 = tpu.matmul %9, %12, %cst_10 {dimension_numbers = #tpu.dot_dimension_numbers<[1], [0], [0], [1], [0, 0, 1, 1], [], []>} : vector<32x2xf32>, vector<2x1xf32>, vector<32x1xf32> -> vector<32x1xf32>
    %cst_11 = arith.constant dense<0.000000e+00> : vector<2x1xf32>
    %14 = tpu.matmul %8, %7, %cst_11 {dimension_numbers = #tpu.dot_dimension_numbers<[1], [0], [0], [1], [0, 0, 1, 1], [], []>} : vector<2x32xf32>, vector<32x1xf32>, vector<2x1xf32> -> vector<2x1xf32>
    %cst_12 = arith.constant 0.000000e+00 : f32
    %15 = vector.broadcast %cst_12 : f32 to vector<2x1xf32>
    %16 = arith.maximumf %14, %15 : vector<2x1xf32>
    %cst_13 = arith.constant dense<0.000000e+00> : vector<32x1xf32>
    %17 = tpu.matmul %9, %16, %cst_13 {dimension_numbers = #tpu.dot_dimension_numbers<[1], [0], [0], [1], [0, 0, 1, 1], [], []>} : vector<32x2xf32>, vector<2x1xf32>, vector<32x1xf32> -> vector<32x1xf32>
    %18 = arith.addf %13, %17 : vector<32x1xf32>
    %cst_14 = arith.constant 0.000000e+00 : f32
    %19 = vector.broadcast %cst_14 : f32 to vector<32x1xf32>
    %20 = arith.subf %19, %18 : vector<32x1xf32>
    %21 = math.exp %20 : vector<32x1xf32>
    %cst_15 = arith.constant 1.000000e+00 : f32
    %22 = vector.broadcast %cst_15 : f32 to vector<32x1xf32>
    %23 = arith.addf %22, %21 : vector<32x1xf32>
    %cst_16 = arith.constant 1.000000e+00 : f32
    %24 = vector.broadcast %cst_16 : f32 to vector<32x1xf32>
    %25 = arith.divf %24, %23 : vector<32x1xf32>
    %c0_17 = arith.constant 0 : index
    %c0_18 = arith.constant 0 : index
    %c0_19 = arith.constant 0 : index
    %26 = vector.load %arg4[%c0_17, %c0_18, %c0_19] : memref<1x32x1xf32, #tpu.memory_space<vmem>>, vector<1x32x1xf32>
    %27 = vector.shape_cast %26 : vector<1x32x1xf32> to vector<32x1xf32>
    %28 = vector.shape_cast %25 : vector<32x1xf32> to vector<1x32x1xf32>
    tpu.vector_store %arg4[%c0_17, %c0_18, %c0_19], %28 {strides = array<i32>} : memref<1x32x1xf32, #tpu.memory_space<vmem>>, vector<1x32x1xf32>,
    return
  }
  func.func @transform_0(%arg0: i32) -> (i32, i32, i32) {
    %c0_i32 = arith.constant 0 : i32
    %c0_i32_0 = arith.constant 0 : i32
    %c0_i32_1 = arith.constant 0 : i32
    return %arg0, %c0_i32, %c0_i32_0 : i32, i32, i32
  }
  func.func @transform_1(%arg0: i32) -> (i32, i32) {
    %c0_i32 = arith.constant 0 : i32
    %c0_i32_0 = arith.constant 0 : i32
    %c0_i32_1 = arith.constant 0 : i32
    return %c0_i32, %c0_i32_0 : i32, i32
  }
  func.func @transform_2(%arg0: i32) -> (i32, i32) {
    %c0_i32 = arith.constant 0 : i32
    %c0_i32_0 = arith.constant 0 : i32
    %c0_i32_1 = arith.constant 0 : i32
    return %c0_i32, %c0_i32_0 : i32, i32
  }
  func.func @transform_3(%arg0: i32) -> (i32, i32, i32) {
    %c0_i32 = arith.constant 0 : i32
    %c0_i32_0 = arith.constant 0 : i32
    %c0_i32_1 = arith.constant 0 : i32
    return %arg0, %c0_i32, %c0_i32_0 : i32, i32, i32
  }
}

</mosaic_0001>

<bundles_post_ra>
// kernel: tpu_custom_call.1
= control target key start
LH: loop header
LB: loop body
LE: loop exit
PB: predicated region body
PF: predicated region fallthrough
CT: control target
= control target key end

     0   :  { %8 = vsyncpa [#allocation3], 0  ;;  %s1049_s0 = inlined_call_operand.hbm [shape: f32[2,32,256], index: 0, kind: input, shape index: {}]   ;;  %s1050_s1 = inlined_call_operand.vmem [shape: f32[2,32], index: 1, kind: input, shape index: {}]   ;;  %s1051_s2 = inlined_call_operand.vmem [shape: f32[32,2], index: 2, kind: input, shape index: {}]   ;;  %s1052_s3 = inlined_call_operand.vmem [shape: f32[2,32,1], index: 3, kind: output, shape index: {}]  }
   0x1   :  { %10 = vsyncpa [#allocation3 + $0x1], 0  ;;  %s916_s12 = smov 0   ;;  %s918_s13 = smov 0  }
   0x2   :  { %s920_s14 = smov 0   ;;  %s922_s15 = smov 0  }
   0x3 LB: > { %s935_s16 = sadd.s32 4294967295, %s888_s15   ;;  %s938_s17 = sadd.s32 1, %s888_s15   ;;  %s888_s15 = sphi %s922_s15, %s1059_s15   ;;  %s884_s14 = sphi %s920_s14, %s1058_s14   ;;  %s880_s13 = sphi %s918_s13, %s1057_s13   ;;  %s876_s12 = sphi %s916_s12, %s1056_s12  }
   0x4   : > { %s20_s18 = ssub.s32 %s888_s15, %s938_s17  ;;  %s23_s19 = sadd.s32 1, %s884_s14 }
   0x5   : > { %p21_p0 = scmp.eq.s32.totalorder %s20_s18, 0  ;;  %p30_p1 = scmp.ne.s32.totalorder %s884_s14, %s880_s13 }
   0x6   : > { %p31_p2 = scmp.eq.s32.totalorder %s888_s15, 0  ;;  %p36_p3 = scmp.ne.s32.totalorder %s880_s13, %s876_s12 }
   0x7   : > { %s948_s20 = scalar_select %p21_p0, %s884_s14, %s23_s19  }
   0x8   : > { %p32_p4 = por %p31_p2, %p30_p1  ;;  %p37_p5 = scmp.eq.s32.totalorder %s935_s16, 0 }
   0x9   : > { %p770_p6 = scmp.lt.s32.totalorder %s888_s15, 2  ;;  %s134_s22 = sand.u32 1, %s884_s14  }
   0xa   : > { %p952_p7 = por %p37_p5, %p36_p3  ;;  %s667_s23 = sshll.u32 %s134_s22, 6 }
   0xb   : > { %s688_s24 = sshll.u32 %s888_s15, 10  ;;  %s138_s28 = scalar_lea.vmem [#allocation2], %s667_s23 }
   0xc   : > { %s961_s27 = scalar_lea.hbm %s1049_s0, %s688_s24  ;;  %s145_s29 = sshll.u32 %s138_s28, 4  ;;  %s963_s29 = int_to_ptr.vmem [resolvable:$true] %s145_s29 }
   0xd   : > { %p965_p8 = pnand %p770_p6, %p32_p4  ;;  %s970_s4 = scalar_lea.sflag [#allocation3], %s134_s22 }
   0xe   : > { %s824_s5 = scalar_lea.hbm %s961_s27, 1024  ;;  %s829_s8 = scalar_lea.hbm %s1049_s0, 2048 }
   0xf   : > { %p825_p10 = scmp.ne.s32.totalorder %s961_s27, %s824_s5  ;;  %p826_p11 = pneg %p965_p8 }
  0x10   : > { %p830_p0 = scmp.lt.u32.totalorder %s961_s27, %s1049_s0  ;;  %p831_p1 = scmp.lt.u32.totalorder %s829_s8, %s824_s5 }
  0x11   : > { %p827_p12 = pnand %p826_p11, %p825_p10  ;;  %p833_p3 = scmp.lt.u32.totalorder %s824_s5, %s961_s27 }
  0x12   : > { %p832_p2 = por %p831_p1, %p830_p0 }
  0x13   : > { %p828_p13 = pneg %p827_p12 }
  0x14   : > { %p834_p4 = por %p833_p3, %p832_p2 }
  0x16   : > { %p835_p5 = pnand %p834_p4, %p828_p13 }
  0x18   : > { %838 = shalt.err (!%p835_p5)
}
  0x19   : > { %s839_s11 = scalar_lea.vmem %s963_s29, 1024  ;;  %s890_s12 = smov [#allocation2]  }
  0x1a   : > { %p840_p6 = scmp.ne.s32.totalorder %s963_s29, %s839_s11  ;;  %s844_s18 = sshll.u32 %s890_s12, 4  ;;  %s845_s18 = int_to_ptr.vmem [resolvable:$false] %s844_s18 }
  0x1b   : > { %s846_s19 = scalar_lea.vmem %s845_s18, 2048  ;;  %p847_p9 = scmp.lt.s32.totalorder %s963_s29, %s845_s18 }
  0x1c   : > { %p842_p10 = pnand %p840_p6, %p826_p11  ;;  %p848_p0 = scmp.lt.s32.totalorder %s846_s19, %s839_s11 }
  0x1e   : > { %p843_p12 = pneg %p842_p10  ;;  %p849_p1 = por %p848_p0, %p847_p9 }
  0x20   : > { %p850_p2 = pnand %p849_p1, %p843_p12 }
  0x22   : > { %853 = shalt.err (!%p850_p2)
}
  0x23   : > { %s891_s22 = smov 256   ;;  %s892_s23 = smov 16  }
  0x24   : > { %769 = dma.hbm_to_vmem [thread:$0]  (!%p965_p8), %s961_s27, 1024, %s963_s29, %s970_s4, %s891_s22, %s891_s22, %s892_s23  }
  0x25   : > { %p153_p11 = scmp.lt.s32.totalorder %s888_s15, 3  ;;  %p1055_p13 = scmp.ge.s32.totalorder %s888_s15, 1 }
  0x27   : > { %p154_p3 = pnand %p1055_p13, %p153_p11 }
  0x28   : > { %s159_s24 = sand.u32 (!%p154_p3), 1, %s880_s13  }
  0x29   : > { %157 = sbr.rel (%p154_p3) target bundleno = 688 (0x2b0), region = 32  ;;  %s671_s25 = sshll.u32 (!%p154_p3), %s159_s24, 6 }
  0x2a   : > { %s160_s26 = scalar_lea.sflag (!%p154_p3), [#allocation3], %s159_s24  ;;  %s163_s28 = scalar_lea.vmem (!%p154_p3), [#allocation2], %s671_s25 }
  0x30   : > { %871 = dma.done.wait (%p952_p7), %s160_s26, 1024  }
  0x31   : > { %873 = vsyncadd (%p952_p7), %s160_s26, 4294966272  ;;  %v195_v0 = vld [vmem:[%s163_s28 + $0x20] sm:$0xff]  ;;  %v196_v1 = vld [vmem:[%s163_s28 + $0x28] sm:$0xff]  ;;  %v893_v16 = vmov 0.0|0.0   ;;  %vm894_vm0 = vmmov 0   ;;  %v895_v17 = vmov 0.0  }
  0x32   : > { %v191_v2 = vld [vmem:[%s163_s28] sm:$0xff]  ;;  %v205_v3 = vadd.f32 %v196_v1, %v195_v0  ;;  %v192_v4 = vld [vmem:[%s163_s28 + $0x8] sm:$0xff]  ;;  %v197_v5 = vld [vmem:[%s163_s28 + $0x30] sm:$0xff]  ;;  %v221_v15 = vmax.f32 %v195_v0, %v196_v1  ;;  %748 = vmatprep.subr.bf16.mxu1 %v893_v16  ;;  %718 = vmatprep.mubr.msk.f32.mxu1 %vm894_vm0, %v895_v17  ;;  %vm232_vm1 = vcmask 261120   ;;  %vm378_vm2 = vcmask 15360   ;;  %p186_p7 = scmp.lt.s32.totalorder %s935_s16, 1 }
  0x33   : > { %v198_v6 = vld [vmem:[%s163_s28 + $0x38] sm:$0xff]  ;;  %v199_v7 = vadd.f32 %v192_v4, %v191_v2  ;;  %v193_v8 = vld [vmem:[%s163_s28 + $0x10] sm:$0xff]  ;;  %v215_v13 = vmax.f32 %v191_v2, %v192_v4  ;;  %v227_v31 = vld [vmem:[%s1050_s1] sm:$0x3]  ;;  %vm391_vm3 = vcmask 1041408   ;;  %vm592_vm4 = vcmask 7168  }
  0x34   : > { %v194_v9 = vld [vmem:[%s163_s28 + $0x18] sm:$0xff]  ;;  %206 = vadd.xlane.f32.xlu1 %v205_v3  ;;  %v208_v10 = vadd.f32 %v198_v6, %v197_v5  ;;  %v224_v14 = vmax.f32 %v197_v5, %v198_v6  ;;  %v228_v35 = vld [vmem:[%s1051_s2] sm:$0xff]  ;;  %v229_v41 = vld [vmem:[%s1051_s2 + $0x8] sm:$0xff]  ;;  %s1061_s16 = smov (!%p186_p7, %s935_s16), 1 }
  0x35   : > { %200 = vadd.xlane.f32.xlu0 %v199_v7  ;;  %v202_v11 = vadd.f32 %v194_v9, %v193_v8  ;;  %v218_v12 = vmax.f32 %v193_v8, %v194_v9  ;;  %734 = vmatprep.mubr.msk.f32.mxu0 %vm378_vm2, %v228_v35  ;;  %v230_v43 = vld [vmem:[%s1051_s2 + $0x10] sm:$0xff]  ;;  %v231_v44 = vld [vmem:[%s1051_s2 + $0x18] sm:$0xff]  ;;  %s689_s9 = sshll.u32 %s1061_s16, 5 }
  0x36   : > { %s190_s12 = scalar_lea.vmem %s1052_s3, %s689_s9 }
  0x38   : > { %209 = vadd.xlane.f32.xlu1 %v208_v10 }
  0x39   : > { %203 = vadd.xlane.f32.xlu0 %v202_v11 }
  0x3c   : > { %219 = vmax.xlane.f32.xlu1 %v218_v12 }
  0x3d   : > { %216 = vmax.xlane.f32.xlu0 %v215_v13 }
  0x40   : > { %225 = vmax.xlane.f32.xlu1 %v224_v14 }
  0x41   : > { %222 = vmax.xlane.f32.xlu0 %v221_v15 }
  0xc1   : > { %v207_v18 = vpop.xlane.xlu1 %206 }
  0xc2   : > { %v201_v19 = vpop.xlane.xlu0 %200  ;;  %v213_v24 = vmul.f32 0.00390625, %v207_v18 }
  0xc3   : > { %v211_v22 = vmul.f32 0.00390625, %v201_v19 }
  0xc5   : > { %v210_v20 = vpop.xlane.xlu1 %209 }
  0xc6   : > { %v204_v21 = vpop.xlane.xlu0 %203  ;;  %v214_v25 = vmul.f32 0.00390625, %v210_v20 }
  0xc7   : > { %v212_v23 = vmul.f32 0.00390625, %v204_v21 }
  0xc8   : > { %v752_v29 = vpack.c.bf16 %v214_v25, %v213_v24 }
  0xc9   : > { %v749_v26 = vpack.c.bf16 %v212_v23, %v211_v22  ;;  %v220_v27 = vpop.xlane.xlu1 %219 }
  0xca   : > { %v217_v28 = vpop.xlane.xlu0 %216 }
  0xcb   : > { %750 = vmatpush3.bf16.msra.mxu1 %v749_v26  ;;  %v755_v30 = vpack.c.bf16 %v220_v27, %v217_v28 }
  0xcc   : > { %751 = vmatprep.subr.bf16.mxu1 %v893_v16 }
  0xcd   : > { %v226_v32 = vpop.xlane.xlu1 %225 }
  0xce   : > { %v223_v33 = vpop.xlane.xlu0 %222 }
  0xcf   : > { %753 = vmatpush3.bf16.msra.mxu1 %v752_v29  ;;  %v758_v34 = vpack.c.bf16 %v226_v32, %v223_v33 }
  0xd0   : > { %754 = vmatprep.subr.bf16.mxu1 %v893_v16 }
  0xd2   : > { %719 = vmatmul.mubr.msk.f32.vlgmr.msra.gmra.mrb[0].mxu1 %vm232_vm1, %v227_v31 }
  0xd3   : > { %756 = vmatpush3.bf16.msra.mxu1 %v755_v30  ;;  %729 = vmatprep.mubr.msk.f32.mxu1 %vm894_vm0, %v895_v17 }
  0xd4   : > { %757 = vmatprep.subr.bf16.mxu1 %v893_v16 }
  0xd7   : > { %759 = vmatpush3.bf16.msra.mxu1 %v758_v34 }
  0xda   : > { %730 = vmatmul.mubr.msk.f32.vlgmr.msra.gmra.mrb[2].mxu1 %vm232_vm1, %v227_v31 }
 0x1a5   : > { %v302_v36 = vpop.f32.mrb[0].mxu1 }
 0x1a6   : > { %v720_v37 = vpop.f32.mrb[1].mxu1  ;;  %v306_v42 = vmax.f32 %v302_v36, 0.0 }
 0x1ad   : > { %v373_v38 = vpop.f32.mrb[2].mxu1 }
 0x1ae   : > { %v377_v39 = vmax.f32 %v373_v38, 0.0  ;;  %v731_v40 = vpop.f32.mrb[3].mxu1 }
 0x1b0   : > { %732 = vmatprep.subr.msk.mxu0 %vm391_vm3, %v377_v39 }
 0x1b1   : > { %733 = vmatpush3.msk.msra.mxu0 %vm391_vm3, %v377_v39 }
 0x1b2   : > { %735 = vmatmul.mubr.msk.f32.vlgmr.msra.gmra.mrb[0].mxu0 %vm378_vm2, %v229_v41  ;;  %740 = vmatprep.subr.msk.mxu0 %vm391_vm3, %v306_v42 }
 0x1b3   : > { %741 = vmatpush3.msk.msra.mxu0 %vm391_vm3, %v306_v42  ;;  %737 = vmatprep.mubr.msk.f32.mxu0 %vm378_vm2, %v230_v43 }
 0x1b6   : > { %738 = vmatmul.mubr.msk.f32.gmra.mrb[2].mxu0 %vm378_vm2, %v231_v44 }
 0x1b7   : > { %742 = vmatprep.mubr.msk.f32.mxu0 %vm378_vm2, %v228_v35 }
 0x1ba   : > { %743 = vmatmul.mubr.msk.f32.vlgmr.msra.gmra.mrb[0].mxu0 %vm378_vm2, %v229_v41 }
 0x1bb   : > { %745 = vmatprep.mubr.msk.f32.mxu0 %vm378_vm2, %v230_v43 }
 0x1be   : > { %746 = vmatmul.mubr.msk.f32.gmra.mrb[2].mxu0 %vm378_vm2, %v231_v44 }
 0x28d   : > { %v744_v45 = vpop.f32.mrb[0].mxu0 }
 0x28e   : > { %v569_v46 = vsub.f32 0.0, %v744_v45  ;;  %v549_v47 = vpop.f32.mrb[1].mxu0 }
 0x28f   : > { %v568_v48 = vsub.f32 0.0, %v549_v47 }
 0x290   : > { %v574_v49 = vmul.f32 1.442695, %v569_v46 }
 0x291   : > { %v572_v50 = vmul.f32 1.442695, %v568_v48  ;;  %v747_v51 = vpop.f32.mrb[2].mxu0 }
 0x292   : > { %808 = vpow2.f32 %v574_v49  ;;  %v571_v52 = vsub.f32 0.0, %v747_v51  ;;  %v559_v53 = vpop.f32.mrb[3].mxu0 }
 0x293   : > { %810 = vpow2.f32 %v572_v50  ;;  %v570_v54 = vsub.f32 0.0, %v559_v53 }
 0x294   : > { %v578_v55 = vmul.f32 1.442695, %v571_v52 }
 0x295   : > { %v576_v56 = vmul.f32 1.442695, %v570_v54 }
 0x296   : > { %812 = vpow2.f32 %v578_v55 }
 0x297   : > { %814 = vpow2.f32 %v576_v56 }
 0x29c   : > { %v809_v57 = vpop.eup %808 }
 0x29d   : > { %v811_v58 = vpop.eup %810  ;;  %v581_v59 = vadd.f32 1.0, %v809_v57 }
 0x29e   : > { %v580_v60 = vadd.f32 1.0, %v811_v58 }
 0x29f   : > { %816 = vrcp.f32 %v581_v59 }
 0x2a0   : > { %v813_v61 = vpop.eup %812  ;;  %818 = vrcp.f32 %v580_v60 }
 0x2a1   : > { %v815_v62 = vpop.eup %814  ;;  %v583_v63 = vadd.f32 1.0, %v813_v61 }
 0x2a2   : > { %v582_v0 = vadd.f32 1.0, %v815_v62 }
 0x2a3   : > { %820 = vrcp.f32 %v583_v63 }
 0x2a4   : > { %822 = vrcp.f32 %v582_v0 }
 0x2a9   : > { %v817_v1 = vpop.eup %816 }
 0x2aa   : > { %v819_v2 = vpop.eup %818  ;;  %594 = vst.msk [vmem:[%s190_s12 + $0x8] sm:$0xff] %vm592_vm4, %v817_v1 }
 0x2ab   : > { %593 = vst.msk [vmem:[%s190_s12] sm:$0xff] %vm592_vm4, %v819_v2 }
 0x2ad   : > { %v821_v3 = vpop.eup %820 }
 0x2ae   : > { %v823_v4 = vpop.eup %822  ;;  %596 = vst.msk [vmem:[%s190_s12 + $0x18] sm:$0xff] %vm592_vm4, %v821_v3 }
 0x2af   : > { %595 = vst.msk [vmem:[%s190_s12 + $0x10] sm:$0xff] %vm592_vm4, %v823_v4 }
 0x2b0 PF: > { %p13_p8 = scmp.ge.s32.totalorder %s938_s17, 4   ;;  %s1056_s12 = smov %s880_s13 }
 0x2b1   : > { %s1057_s13 = smov %s884_s14  ;;  %s1058_s14 = smov %s948_s20 }
 0x2b2   : > { %s1059_s15 = smov %s938_s17  ;;  %15 = sbr.rel (!%p13_p8) target bundleno = 3 (0x3), region = 72 }
 0x2b9   :  { %618 = vsyncpa [#allocation3], 1 }
 0x2ba   :  { %620 = vsyncpa [#allocation3 + $0x1], 1 }

</bundles_post_ra>
